<compile_context>
chip_gen: v7x
topology: tpu7x:2x2x1
jax: 0.10.0
libtpu: 0.0.40
codegen_flags: <defaults>
</compile_context>

<pallas_src>
import jax
import jax.numpy as jnp
import numpy as np
from jax.experimental import pallas as pl
from jax.experimental.pallas import tpu as pltpu

C = 32        # in_planes
N = 64        # total number of points (== o[-1])
B = 4         # number of batch segments in offset vector `o`
BN_EPS = 1e-5


def _transition_up_kernel(o_ref, x_ref, w2t_ref, b2_ref,
                          w1at_ref, w1bt_ref, bias_ref, out_ref):
    """Fused: segmented mean -> linear2 -> hoisted seg_bias -> linear1+BN+ReLU.

    o_ref: (B,) int32 cumulative segment ends in SMEM (scalar prefetch).
    x_ref: (N, C). w2t/w1at/w1bt: (C, C) with BN scale folded into w1at/w1bt.
    bias_ref: (1, C) = b1*scale + shift.
    """
    n, c = x_ref.shape
    b = o_ref.shape[0]
    x = x_ref[...]

    # Lane-dense (B, N) segment membership mask, starts derived from ends.
    point_idx = jax.lax.broadcasted_iota(jnp.int32, (b, n), 1)   # (B, N)
    seg_idx = jax.lax.broadcasted_iota(jnp.int32, (b, 1), 0)     # (B, 1)
    end_col = jnp.zeros((b, 1), jnp.int32)
    start_col = jnp.zeros((b, 1), jnp.int32)
    for j in range(b):                                           # B small & static
        end_col = jnp.where(seg_idx == j, o_ref[j], end_col)
        if j > 0:
            start_col = jnp.where(seg_idx == j, o_ref[j - 1], start_col)
    mask01 = ((point_idx >= start_col) & (point_idx < end_col)).astype(jnp.float32)
    cnt = jnp.maximum(end_col - start_col, 1).astype(jnp.float32)   # guard empty segs

    # Segmented mean: 0/1 mask matmul on the MXU, exact divide on the (B,C) tile.
    seg_sum = jnp.dot(mask01, x, preferred_element_type=jnp.float32)  # (B, C)
    mean = seg_sum / cnt                                              # (B, C)

    # linear2 + ReLU on per-segment means.
    g = jnp.maximum(
        jnp.dot(mean, w2t_ref[...], preferred_element_type=jnp.float32) + b2_ref[...],
        0.0)                                                          # (B, C)

    # Hoisted segment-constant half of linear1 (BN already folded in).
    seg_bias = (jnp.dot(g, w1bt_ref[...], preferred_element_type=jnp.float32)
                + bias_ref[...])                                      # (B, C)

    # Scatter seg_bias back to points with a VPU where-chain over the row iota
    # (segments are contiguous), instead of a (N,B)@(B,C) scatter matmul.
    row_idx = jax.lax.broadcasted_iota(jnp.int32, (n, 1), 0)          # (N, 1)
    per_row = jnp.broadcast_to(seg_bias[b - 1:b, :], (n, c))
    for j in range(b - 2, -1, -1):
        per_row = jnp.where(row_idx < o_ref[j], seg_bias[j:j + 1, :], per_row)

    # Point-dependent half of linear1 (independent of the mean->g chain) + ReLU.
    h = jnp.dot(x, w1at_ref[...], preferred_element_type=jnp.float32) + per_row
    out_ref[...] = jnp.maximum(h, 0.0)


def _transition_up_forward_impl(x, o, params):
    """pxo2-is-None branch of TransitionUp.forward. x: (N, C) f32, o: (B,) i32."""
    n, c = x.shape
    b = o.shape[0]
    o = o.astype(jnp.int32)

    w2t = params["W2"].T                                             # (C, C)
    b2 = params["b2"].reshape(1, c)

    # Fold eval-mode BatchNorm1d into linear1's weights / bias.
    scale = params["bn_gamma"] / jnp.sqrt(params["bn_rv"] + BN_EPS)  # (C,)
    shift = params["bn_beta"] - params["bn_rm"] * scale              # (C,)
    w1 = params["W1"]                                                # (C, 2C)
    w1at_s = w1[:, :c].T * scale[None, :]                            # (C, C) acts on x
    w1bt_s = w1[:, c:].T * scale[None, :]                            # (C, C) acts on g
    bias_s = (params["b1"] * scale + shift).reshape(1, c)            # (1, C)

    grid_spec = pltpu.PrefetchScalarGridSpec(
        num_scalar_prefetch=1,          # o (segment ends) -> SMEM
        grid=(1,),
        in_specs=[
            pl.BlockSpec((n, c), lambda i, o_ref: (0, 0)),
            pl.BlockSpec((c, c), lambda i, o_ref: (0, 0)),
            pl.BlockSpec((1, c), lambda i, o_ref: (0, 0)),
            pl.BlockSpec((c, c), lambda i, o_ref: (0, 0)),
            pl.BlockSpec((c, c), lambda i, o_ref: (0, 0)),
            pl.BlockSpec((1, c), lambda i, o_ref: (0, 0)),
        ],
        out_specs=pl.BlockSpec((n, c), lambda i, o_ref: (0, 0)),
    )
    out = pl.pallas_call(
        _transition_up_kernel,
        out_shape=jax.ShapeDtypeStruct((n, c), jnp.float32),
        grid_spec=grid_spec,
    )(o, x, w2t, b2, w1at_s, w1bt_s, bias_s)
    return out


# JIT the whole forward: the BN fold / transposes / reshapes compile together
# with the pallas_call instead of running as unjitted XLA ops around it.
transition_up_forward = jax.jit(_transition_up_forward_impl)


def ref_forward(x, o, params):
    """Pure-JAX reference mirroring the PyTorch forward (pxo2 is None)."""
    segs = []
    start = 0
    for bi in range(o.shape[0]):
        e = int(o[bi])
        cnt = e - start
        xb = x[start:e]
        mean = xb.sum(0, keepdims=True) / cnt
        g = jnp.maximum(mean @ params["W2"].T + params["b2"], 0.0)
        segs.append(jnp.concatenate([xb, jnp.tile(g, (cnt, 1))], axis=1))
        start = e
    xc = jnp.concatenate(segs, axis=0)
    h = xc @ params["W1"].T + params["b1"]
    h = ((h - params["bn_rm"]) / jnp.sqrt(params["bn_rv"] + BN_EPS)
         * params["bn_gamma"] + params["bn_beta"])
    return jnp.maximum(h, 0.0)


def init_params(key, c):
    k1, k2, k3, k4 = jax.random.split(key, 4)
    lim1 = 1.0 / jnp.sqrt(2 * c)
    lim2 = 1.0 / jnp.sqrt(c)
    return {
        # linear1: Linear(2*C, C) + BatchNorm1d(C) + ReLU
        "W1": jax.random.uniform(k1, (c, 2 * c), jnp.float32, -lim1, lim1),
        "b1": jax.random.uniform(k2, (c,), jnp.float32, -lim1, lim1),
        # linear2: Linear(C, C) + ReLU
        "W2": jax.random.uniform(k3, (c, c), jnp.float32, -lim2, lim2),
        "b2": jax.random.uniform(k4, (c,), jnp.float32, -lim2, lim2),
        # BatchNorm1d fresh-init params / running stats (eval-mode semantics)
        "bn_gamma": jnp.ones((c,), jnp.float32),
        "bn_beta": jnp.zeros((c,), jnp.float32),
        "bn_rm": jnp.zeros((c,), jnp.float32),
        "bn_rv": jnp.ones((c,), jnp.float32),
    }


if __name__ == "__main__":
    key = jax.random.PRNGKey(0)
    kx, kp = jax.random.split(key)
    x = jax.random.normal(kx, (N, C), jnp.float32)
    o = jnp.array([12, 28, 48, 64], jnp.int32)   # cumulative segment offsets
    params = init_params(kp, C)

    out = transition_up_forward(x, o, params)
    out = jax.block_until_ready(out)

    ref = ref_forward(x, o, params)
    np.testing.assert_allclose(np.asarray(out), np.asarray(ref), rtol=1e-5, atol=1e-5)
    print("KERNEL_OK")
</pallas_src>

<mosaic_0001>
module attributes {stable_mosaic.version = 11 : i64} {
  func.func @_transition_up_kernel(%arg0: i32, %arg1: memref<4xi32, #tpu.memory_space<smem>>, %arg2: memref<64x32xf32, #tpu.memory_space<vmem>>, %arg3: memref<32x32xf32, #tpu.memory_space<vmem>>, %arg4: memref<1x32xf32, #tpu.memory_space<vmem>>, %arg5: memref<32x32xf32, #tpu.memory_space<vmem>>, %arg6: memref<32x32xf32, #tpu.memory_space<vmem>>, %arg7: memref<1x32xf32, #tpu.memory_space<vmem>>, %arg8: memref<64x32xf32, #tpu.memory_space<vmem>>) attributes {dimension_semantics = [#tpu.dimension_semantics<arbitrary>], iteration_bounds = array<i64: 1>, scalar_prefetch = 1 : i64, scratch_operands = 0 : i64, tpu.core_type = #tpu.core_type<tc>, window_params = [{pipeline_mode = #tpu.pipeline_mode<synchronous>, transform_indices = @transform_0, window_bounds = array<i64: 64, 32>}, {pipeline_mode = #tpu.pipeline_mode<synchronous>, transform_indices = @transform_1, window_bounds = array<i64: 32, 32>}, {pipeline_mode = #tpu.pipeline_mode<synchronous>, transform_indices = @transform_2, window_bounds = array<i64: 1, 32>}, {pipeline_mode = #tpu.pipeline_mode<synchronous>, transform_indices = @transform_3, window_bounds = array<i64: 32, 32>}, {pipeline_mode = #tpu.pipeline_mode<synchronous>, transform_indices = @transform_4, window_bounds = array<i64: 32, 32>}, {pipeline_mode = #tpu.pipeline_mode<synchronous>, transform_indices = @transform_5, window_bounds = array<i64: 1, 32>}, {pipeline_mode = #tpu.pipeline_mode<synchronous>, transform_indices = @transform_6, window_bounds = array<i64: 64, 32>}]} {
    %c0 = arith.constant 0 : index
    %c0_0 = arith.constant 0 : index
    %0 = vector.load %arg2[%c0, %c0_0] : memref<64x32xf32, #tpu.memory_space<vmem>>, vector<64x32xf32>
    %1 = tpu.iota {dimensions = array<i32: 1>} : vector<4x64xi32>
    %2 = tpu.iota {dimensions = array<i32: 0>} : vector<4x1xi32>
    %c0_i32 = arith.constant 0 : i32
    %3 = vector.broadcast %c0_i32 : i32 to vector<4x1xi32>
    %c0_i32_1 = arith.constant 0 : i32
    %4 = vector.broadcast %c0_i32_1 : i32 to vector<4x1xi32>
    %c0_i32_2 = arith.constant 0 : i32
    %5 = vector.broadcast %c0_i32_2 : i32 to vector<4x1xi32>
    %6 = arith.cmpi eq, %2, %5 : vector<4x1xi32>
    %c0_3 = arith.constant 0 : index
    %7 = memref.load %arg1[%c0_3] : memref<4xi32, #tpu.memory_space<smem>>
    %8 = vector.broadcast %7 : i32 to vector<4x1xi32>
    %9 = arith.select %6, %8, %3 : vector<4x1xi1>, vector<4x1xi32>
    %c1_i32 = arith.constant 1 : i32
    %10 = vector.broadcast %c1_i32 : i32 to vector<4x1xi32>
    %11 = arith.cmpi eq, %2, %10 : vector<4x1xi32>
    %c1 = arith.constant 1 : index
    %12 = memref.load %arg1[%c1] : memref<4xi32, #tpu.memory_space<smem>>
    %13 = vector.broadcast %12 : i32 to vector<4x1xi32>
    %14 = arith.select %11, %13, %9 : vector<4x1xi1>, vector<4x1xi32>
    %c1_i32_4 = arith.constant 1 : i32
    %15 = vector.broadcast %c1_i32_4 : i32 to vector<4x1xi32>
    %16 = arith.cmpi eq, %2, %15 : vector<4x1xi32>
    %c0_5 = arith.constant 0 : index
    %17 = memref.load %arg1[%c0_5] : memref<4xi32, #tpu.memory_space<smem>>
    %18 = vector.broadcast %17 : i32 to vector<4x1xi32>
    %19 = arith.select %16, %18, %4 : vector<4x1xi1>, vector<4x1xi32>
    %c2_i32 = arith.constant 2 : i32
    %20 = vector.broadcast %c2_i32 : i32 to vector<4x1xi32>
    %21 = arith.cmpi eq, %2, %20 : vector<4x1xi32>
    %c2 = arith.constant 2 : index
    %22 = memref.load %arg1[%c2] : memref<4xi32, #tpu.memory_space<smem>>
    %23 = vector.broadcast %22 : i32 to vector<4x1xi32>
    %24 = arith.select %21, %23, %14 : vector<4x1xi1>, vector<4x1xi32>
    %c2_i32_6 = arith.constant 2 : i32
    %25 = vector.broadcast %c2_i32_6 : i32 to vector<4x1xi32>
    %26 = arith.cmpi eq, %2, %25 : vector<4x1xi32>
    %c1_7 = arith.constant 1 : index
    %27 = memref.load %arg1[%c1_7] : memref<4xi32, #tpu.memory_space<smem>>
    %28 = vector.broadcast %27 : i32 to vector<4x1xi32>
    %29 = arith.select %26, %28, %19 : vector<4x1xi1>, vector<4x1xi32>
    %c3_i32 = arith.constant 3 : i32
    %30 = vector.broadcast %c3_i32 : i32 to vector<4x1xi32>
    %31 = arith.cmpi eq, %2, %30 : vector<4x1xi32>
    %c3 = arith.constant 3 : index
    %32 = memref.load %arg1[%c3] : memref<4xi32, #tpu.memory_space<smem>>
    %33 = vector.broadcast %32 : i32 to vector<4x1xi32>
    %34 = arith.select %31, %33, %24 : vector<4x1xi1>, vector<4x1xi32>
    %c3_i32_8 = arith.constant 3 : i32
    %35 = vector.broadcast %c3_i32_8 : i32 to vector<4x1xi32>
    %36 = arith.cmpi eq, %2, %35 : vector<4x1xi32>
    %c2_9 = arith.constant 2 : index
    %37 = memref.load %arg1[%c2_9] : memref<4xi32, #tpu.memory_space<smem>>
    %38 = vector.broadcast %37 : i32 to vector<4x1xi32>
    %39 = arith.select %36, %38, %29 : vector<4x1xi1>, vector<4x1xi32>
    %40 = vector.broadcast %39 : vector<4x1xi32> to vector<4x64xi32>
    %41 = arith.cmpi sge, %1, %40 : vector<4x64xi32>
    %42 = vector.broadcast %34 : vector<4x1xi32> to vector<4x64xi32>
    %43 = arith.cmpi slt, %1, %42 : vector<4x64xi32>
    %44 = arith.andi %41, %43 : vector<4x64xi1>
    %45 = arith.extui %44 : vector<4x64xi1> to vector<4x64xi32>
    %46 = arith.sitofp %45 : vector<4x64xi32> to vector<4x64xf32>
    %47 = arith.subi %34, %39 : vector<4x1xi32>
    %c1_i32_10 = arith.constant 1 : i32
    %48 = vector.broadcast %c1_i32_10 : i32 to vector<4x1xi32>
    %49 = arith.maxsi %47, %48 : vector<4x1xi32>
    %50 = arith.sitofp %49 : vector<4x1xi32> to vector<4x1xf32>
    %cst = arith.constant dense<0.000000e+00> : vector<4x32xf32>
    %51 = tpu.matmul %46, %0, %cst {dimension_numbers = #tpu.dot_dimension_numbers<[1], [0], [0], [1], [0, 0, 1, 1], [], []>} : vector<4x64xf32>, vector<64x32xf32>, vector<4x32xf32> -> vector<4x32xf32>
    %52 = vector.broadcast %50 : vector<4x1xf32> to vector<4x32xf32>
    %53 = arith.divf %51, %52 : vector<4x32xf32>
    %c0_11 = arith.constant 0 : index
    %c0_12 = arith.constant 0 : index
    %54 = vector.load %arg3[%c0_11, %c0_12] : memref<32x32xf32, #tpu.memory_space<vmem>>, vector<32x32xf32>
    %cst_13 = arith.constant dense<0.000000e+00> : vector<4x32xf32>
    %55 = tpu.matmul %53, %54, %cst_13 {dimension_numbers = #tpu.dot_dimension_numbers<[1], [0], [0], [1], [0, 0, 1, 1], [], []>} : vector<4x32xf32>, vector<32x32xf32>, vector<4x32xf32> -> vector<4x32xf32>
    %c0_14 = arith.constant 0 : index
    %c0_15 = arith.constant 0 : index
    %56 = vector.load %arg4[%c0_14, %c0_15] : memref<1x32xf32, #tpu.memory_space<vmem>>, vector<1x32xf32>
    %57 = vector.broadcast %56 : vector<1x32xf32> to vector<4x32xf32>
    %58 = arith.addf %55, %57 : vector<4x32xf32>
    %cst_16 = arith.constant 0.000000e+00 : f32
    %59 = vector.broadcast %cst_16 : f32 to vector<4x32xf32>
    %60 = arith.maximumf %58, %59 : vector<4x32xf32>
    %c0_17 = arith.constant 0 : index
    %c0_18 = arith.constant 0 : index
    %61 = vector.load %arg6[%c0_17, %c0_18] : memref<32x32xf32, #tpu.memory_space<vmem>>, vector<32x32xf32>
    %cst_19 = arith.constant dense<0.000000e+00> : vector<4x32xf32>
    %62 = tpu.matmul %60, %61, %cst_19 {dimension_numbers = #tpu.dot_dimension_numbers<[1], [0], [0], [1], [0, 0, 1, 1], [], []>} : vector<4x32xf32>, vector<32x32xf32>, vector<4x32xf32> -> vector<4x32xf32>
    %c0_20 = arith.constant 0 : index
    %c0_21 = arith.constant 0 : index
    %63 = vector.load %arg7[%c0_20, %c0_21] : memref<1x32xf32, #tpu.memory_space<vmem>>, vector<1x32xf32>
    %64 = vector.broadcast %63 : vector<1x32xf32> to vector<4x32xf32>
    %65 = arith.addf %62, %64 : vector<4x32xf32>
    %66 = tpu.iota {dimensions = array<i32: 0>} : vector<64x1xi32>
    %67 = vector.extract_strided_slice %65 {offsets = [3, 0], sizes = [1, 32], strides = [1, 1]} : vector<4x32xf32> to vector<1x32xf32>
    %68 = vector.shape_cast %67 : vector<1x32xf32> to vector<1x32xf32>
    %69 = vector.broadcast %68 : vector<1x32xf32> to vector<64x32xf32>
    %c2_22 = arith.constant 2 : index
    %70 = memref.load %arg1[%c2_22] : memref<4xi32, #tpu.memory_space<smem>>
    %71 = vector.broadcast %70 : i32 to vector<64x1xi32>
    %72 = arith.cmpi slt, %66, %71 : vector<64x1xi32>
    %73 = vector.extract_strided_slice %65 {offsets = [2, 0], sizes = [1, 32], strides = [1, 1]} : vector<4x32xf32> to vector<1x32xf32>
    %74 = vector.shape_cast %72 : vector<64x1xi1> to vector<64x1xi1>
    %75 = vector.broadcast %74 : vector<64x1xi1> to vector<64x32xi1>
    %76 = vector.shape_cast %73 : vector<1x32xf32> to vector<1x32xf32>
    %77 = vector.broadcast %76 : vector<1x32xf32> to vector<64x32xf32>
    %78 = arith.select %75, %77, %69 : vector<64x32xi1>, vector<64x32xf32>
    %c1_23 = arith.constant 1 : index
    %79 = memref.load %arg1[%c1_23] : memref<4xi32, #tpu.memory_space<smem>>
    %80 = vector.broadcast %79 : i32 to vector<64x1xi32>
    %81 = arith.cmpi slt, %66, %80 : vector<64x1xi32>
    %82 = vector.extract_strided_slice %65 {offsets = [1, 0], sizes = [1, 32], strides = [1, 1]} : vector<4x32xf32> to vector<1x32xf32>
    %83 = vector.shape_cast %81 : vector<64x1xi1> to vector<64x1xi1>
    %84 = vector.broadcast %83 : vector<64x1xi1> to vector<64x32xi1>
    %85 = vector.shape_cast %82 : vector<1x32xf32> to vector<1x32xf32>
    %86 = vector.broadcast %85 : vector<1x32xf32> to vector<64x32xf32>
    %87 = arith.select %84, %86, %78 : vector<64x32xi1>, vector<64x32xf32>
    %c0_24 = arith.constant 0 : index
    %88 = memref.load %arg1[%c0_24] : memref<4xi32, #tpu.memory_space<smem>>
    %89 = vector.broadcast %88 : i32 to vector<64x1xi32>
    %90 = arith.cmpi slt, %66, %89 : vector<64x1xi32>
    %91 = vector.extract_strided_slice %65 {offsets = [0, 0], sizes = [1, 32], strides = [1, 1]} : vector<4x32xf32> to vector<1x32xf32>
    %92 = vector.shape_cast %90 : vector<64x1xi1> to vector<64x1xi1>
    %93 = vector.broadcast %92 : vector<64x1xi1> to vector<64x32xi1>
    %94 = vector.shape_cast %91 : vector<1x32xf32> to vector<1x32xf32>
    %95 = vector.broadcast %94 : vector<1x32xf32> to vector<64x32xf32>
    %96 = arith.select %93, %95, %87 : vector<64x32xi1>, vector<64x32xf32>
    %c0_25 = arith.constant 0 : index
    %c0_26 = arith.constant 0 : index
    %97 = vector.load %arg5[%c0_25, %c0_26] : memref<32x32xf32, #tpu.memory_space<vmem>>, vector<32x32xf32>
    %cst_27 = arith.constant dense<0.000000e+00> : vector<64x32xf32>
    %98 = tpu.matmul %0, %97, %cst_27 {dimension_numbers = #tpu.dot_dimension_numbers<[1], [0], [0], [1], [0, 0, 1, 1], [], []>} : vector<64x32xf32>, vector<32x32xf32>, vector<64x32xf32> -> vector<64x32xf32>
    %99 = arith.addf %98, %96 : vector<64x32xf32>
    %cst_28 = arith.constant 0.000000e+00 : f32
    %100 = vector.broadcast %cst_28 : f32 to vector<64x32xf32>
    %101 = arith.maximumf %99, %100 : vector<64x32xf32>
    %c0_29 = arith.constant 0 : index
    %c0_30 = arith.constant 0 : index
    %102 = vector.load %arg8[%c0_29, %c0_30] : memref<64x32xf32, #tpu.memory_space<vmem>>, vector<64x32xf32>
    tpu.vector_store %arg8[%c0_29, %c0_30], %101 {strides = array<i32>} : memref<64x32xf32, #tpu.memory_space<vmem>>, vector<64x32xf32>,
    return
  }
  func.func @transform_0(%arg0: i32, %arg1: memref<4xi32, #tpu.memory_space<smem>>) -> (i32, i32) {
    %c0_i32 = arith.constant 0 : i32
    %c0_i32_0 = arith.constant 0 : i32
    %c0_i32_1 = arith.constant 0 : i32
    return %c0_i32, %c0_i32_0 : i32, i32
  }
  func.func @transform_1(%arg0: i32, %arg1: memref<4xi32, #tpu.memory_space<smem>>) -> (i32, i32) {
    %c0_i32 = arith.constant 0 : i32
    %c0_i32_0 = arith.constant 0 : i32
    %c0_i32_1 = arith.constant 0 : i32
    return %c0_i32, %c0_i32_0 : i32, i32
  }
  func.func @transform_2(%arg0: i32, %arg1: memref<4xi32, #tpu.memory_space<smem>>) -> (i32, i32) {
    %c0_i32 = arith.constant 0 : i32
    %c0_i32_0 = arith.constant 0 : i32
    %c0_i32_1 = arith.constant 0 : i32
    return %c0_i32, %c0_i32_0 : i32, i32
  }
  func.func @transform_3(%arg0: i32, %arg1: memref<4xi32, #tpu.memory_space<smem>>) -> (i32, i32) {
    %c0_i32 = arith.constant 0 : i32
    %c0_i32_0 = arith.constant 0 : i32
    %c0_i32_1 = arith.constant 0 : i32
    return %c0_i32, %c0_i32_0 : i32, i32
  }
  func.func @transform_4(%arg0: i32, %arg1: memref<4xi32, #tpu.memory_space<smem>>) -> (i32, i32) {
    %c0_i32 = arith.constant 0 : i32
    %c0_i32_0 = arith.constant 0 : i32
    %c0_i32_1 = arith.constant 0 : i32
    return %c0_i32, %c0_i32_0 : i32, i32
  }
  func.func @transform_5(%arg0: i32, %arg1: memref<4xi32, #tpu.memory_space<smem>>) -> (i32, i32) {
    %c0_i32 = arith.constant 0 : i32
    %c0_i32_0 = arith.constant 0 : i32
    %c0_i32_1 = arith.constant 0 : i32
    return %c0_i32, %c0_i32_0 : i32, i32
  }
  func.func @transform_6(%arg0: i32, %arg1: memref<4xi32, #tpu.memory_space<smem>>) -> (i32, i32) {
    %c0_i32 = arith.constant 0 : i32
    %c0_i32_0 = arith.constant 0 : i32
    %c0_i32_1 = arith.constant 0 : i32
    return %c0_i32, %c0_i32_0 : i32, i32
  }
}

</mosaic_0001>

<bundles_post_ra>
// kernel: _transition_up_forward_impl.1
= control target key start
LH: loop header
LB: loop body
LE: loop exit
PB: predicated region body
PF: predicated region fallthrough
CT: control target
= control target key end

     0   :  { %s1101_s0 = inlined_call_operand.vmem [shape: s32[4], index: 0, kind: input, shape index: {}]   ;;  %s1102_s1 = inlined_call_operand.vmem [shape: f32[64,32], index: 1, kind: input, shape index: {}]   ;;  %s1103_s2 = inlined_call_operand.vmem [shape: f32[32,32], index: 2, kind: input, shape index: {}]   ;;  %s1104_s3 = inlined_call_operand.vmem [shape: f32[1,32], index: 3, kind: input, shape index: {}]   ;;  %s1105_s4 = inlined_call_operand.vmem [shape: f32[32,32], index: 4, kind: input, shape index: {}]   ;;  %s1106_s5 = inlined_call_operand.vmem [shape: f32[32,32], index: 5, kind: input, shape index: {}]   ;;  %s1107_s6 = inlined_call_operand.vmem [shape: f32[1,32], index: 6, kind: input, shape index: {}]   ;;  %s1108_s7 = inlined_call_operand.vmem [shape: f32[64,32], index: 7, kind: output, shape index: {}]  }
   0x1   :  { %s12_s26 = sshll.u32 %s1101_s0, 4  ;;  %s13_s26 = int_to_ptr.vmem [resolvable:$true] %s12_s26 }
   0x2   :  { %s739_s27 = scalar_lea.vmem %s13_s26, 16  ;;  %p744_p1 = scmp.lt.s32.totalorder %s13_s26, %s13_s26 }
   0x3   :  { %p740_p0 = scmp.ne.s32.totalorder %s13_s26, %s739_s27  ;;  %p745_p2 = scmp.lt.s32.totalorder %s739_s27, %s739_s27 }
   0x5   :  { %p746_p3 = por %p745_p2, %p744_p1 }
   0x7   :  { %p747_p4 = pnand %p746_p3, %p740_p0 }
   0x9   :  { %750 = shalt.err (!%p747_p4)  }
   0xa   :  { %s753_s28 = smov [#allocation3]  }
   0xb   :  { %15 = dma.vmem_to_smem %s13_s26, 16, %s753_s28, [#allocation2] }
   0xc   :  { %751 = dma.done.wait [#allocation2], 16 }
   0xd   :  { %752 = vsyncadd [#allocation2], 4294967280 }
   0xe   :  { %17 = sfence }
   0xf   :  { %v803_v0 = vld [vmem:[%s1102_s1] sm:$0xff]  ;;  %v808_v1 = vld [vmem:[%s1102_s1 + $0x8] sm:$0xff]  ;;  %v813_v2 = vld [vmem:[%s1102_s1 + $0x10] sm:$0xff]  ;;  %v38_v3 = vlaneseq  ;;  %v754_v4 = vmov 0.0|0.0   ;;  %vm755_vm0 = vmmov 0   ;;  %v756_v7 = vmov 0.0  }
  0x10   :  { %697 = vmatprep.subr.bf16.mxu0 %v754_v4  ;;  %v698_v5 = vpack.c.bf16 %v808_v1, %v803_v0  ;;  %v821_v6 = vld [vmem:[%s1102_s1 + $0x18] sm:$0xff]  ;;  %652 = vmatprep.mubr.msk.f32.mxu0 %vm755_vm0, %v756_v7  ;;  %s43_s13 = sld [smem:[#allocation3]]  ;;  %s588_s14 = sld [smem:[#allocation3 + $0x1]]  ;;  %v146_v10 = vld [vmem:[%s1103_s2] sm:$0xff]  ;;  %v147_v11 = vld [vmem:[%s1103_s2 + $0x8] sm:$0xff]  ;;  %vm70_vm8 = vcmask 523264  }
  0x11   :  { %v825_v8 = vshrl.u32 %v38_v3, 7  ;;  %709 = vmatprep.subr.bf16.mxu1 %v754_v4  ;;  %663 = vmatprep.mubr.msk.f32.mxu1 %vm755_vm0, %v756_v7  ;;  %v701_v9 = vpack.c.bf16 %v821_v6, %v813_v2  ;;  %s589_s15 = sld [smem:[#allocation3 + $0x2]]  ;;  %s832_s16 = sld [smem:[#allocation3 + $0x3]]  ;;  %v844_v12 = vld [vmem:[%s1102_s1 + $0x20] sm:$0xff]  ;;  %v849_v13 = vld [vmem:[%s1102_s1 + $0x28] sm:$0xff]  ;;  %v710_v14 = vpack.c.bf16 %v147_v11, %v146_v10  ;;  %v39_v16 = vand.u32 127, %v38_v3 }
  0x12   :  { %699 = vmatpush3.bf16.msra.mxu0 %v698_v5  ;;  %v704_v15 = vpack.c.bf16 %v849_v13, %v844_v12  ;;  %v863_v18 = vld [vmem:[%s1102_s1 + $0x30] sm:$0xff]  ;;  %v868_v19 = vld [vmem:[%s1102_s1 + $0x38] sm:$0xff]  ;;  %vm1109_vm9 = vcmask 261120   ;;  %v435_v36 = vld [vmem:[%s1105_s4] sm:$0xff] }
  0x13   :  { %700 = vmatprep.subr.bf16.mxu0 %v754_v4  ;;  %vm42_vm1 = vcmp.eq.s32.totalorder %v825_v8, 0  ;;  %vm46_vm2 = vcmp.eq.s32.totalorder %v825_v8, 1  ;;  %vm51_vm3 = vcmp.eq.s32.totalorder %v825_v8, 2  ;;  %vm56_vm4 = vcmp.eq.s32.totalorder %v825_v8, 3  ;;  %711 = vmatpush3.bf16.msra.mxu1 %v710_v14  ;;  %v148_v33 = vld [vmem:[%s1103_s2 + $0x10] sm:$0xff]  ;;  %v149_v34 = vld [vmem:[%s1103_s2 + $0x18] sm:$0xff] }
  0x14   :  { %712 = vmatprep.subr.bf16.mxu1 %v754_v4  ;;  %v707_v29 = vpack.c.bf16 %v868_v19, %v863_v18  ;;  %v713_v35 = vpack.c.bf16 %v149_v34, %v148_v33  ;;  %v436_v37 = vld [vmem:[%s1105_s4 + $0x8] sm:$0xff]  ;;  %v232_v41 = vld [vmem:[%s1106_s5] sm:$0xff]  ;;  %v234_v48 = vld [vmem:[%s1106_s5 + $0x10] sm:$0xff]  ;;  %v316_v63 = vadd.s32 8, %v825_v8  ;;  %v353_v3 = vsub.s32 2, %v825_v8 }
  0x15   :  { %v721_v38 = vpack.c.bf16 %v436_v37, %v435_v36  ;;  %v233_v42 = vld [vmem:[%s1106_s5 + $0x8] sm:$0xff]  ;;  %v235_v49 = vld [vmem:[%s1106_s5 + $0x18] sm:$0xff]  ;;  %v437_v51 = vld [vmem:[%s1105_s4 + $0x10] sm:$0xff]  ;;  %v425_v5 = vsub.s32 0, %v825_v8  ;;  %v978_v10 = vadd.s32 56, %v825_v8 }
  0x16   :  { %702 = vmatpush3.bf16.msra.mxu0 %v701_v9  ;;  %v856_v17 = vstv %s43_s13  ;;  %v871_v21 = vstv %s588_s14  ;;  %v716_v45 = vpack.c.bf16 %v233_v42, %v232_v41  ;;  %v719_v50 = vpack.c.bf16 %v235_v49, %v234_v48  ;;  %v438_v52 = vld [vmem:[%s1105_s4 + $0x18] sm:$0xff]  ;;  %v593_v54 = vld [vmem:[%s1104_s3] ss:$0 sm:$0xff] }
  0x17   :  { %703 = vmatprep.subr.bf16.mxu0 %v754_v4  ;;  %v45_v20 = vsel %vm42_vm1, %v856_v17, 0  ;;  %v50_v22 = vsel %vm46_vm2, %v856_v17, 0  ;;  %v880_v24 = vstv %s589_s15  ;;  %v58_v26 = vstv %s832_s16  ;;  %714 = vmatpush3.bf16.msra.mxu1 %v713_v35  ;;  %v595_v9 = vld [vmem:[%s1107_s6] ss:$0 sm:$0xff] }
  0x18   :  { %v49_v23 = vsel %vm46_vm2, %v871_v21, %v45_v20  ;;  %v55_v25 = vsel %vm51_vm3, %v871_v21, %v50_v22  ;;  %715 = vmatprep.subr.bf16.mxu1 %v754_v4  ;;  %v725_v53 = vpack.c.bf16 %v438_v52, %v437_v51  ;;  %vm328_vm11 = vcmp.lt.s32.totalorder %v316_v63, %v880_v24 }
  0x19   :  { %v54_v27 = vsel %vm51_vm3, %v880_v24, %v49_v23  ;;  %v60_v28 = vsel %vm56_vm4, %v880_v24, %v55_v25  ;;  %vm364_vm12 = vcmp.lt.s32.totalorder %v316_v63, %v871_v21  ;;  %vm327_vm13 = vcmp.lt.s32.totalorder %v825_v8, %v880_v24 }
  0x1a   :  { %705 = vmatpush3.bf16.msra.mxu0 %v704_v15  ;;  %v59_v30 = vsel %vm56_vm4, %v58_v26, %v54_v27  ;;  %vm61_vm5 = vcmp.ge.s32.totalorder %v39_v16, %v60_v28  ;;  %vm400_vm14 = vcmp.lt.s32.totalorder %v316_v63, %v856_v17  ;;  %vm363_vm15 = vcmp.lt.s32.totalorder %v825_v8, %v871_v21 }
  0x1b   :  { %706 = vmatprep.subr.bf16.mxu0 %v754_v4  ;;  %vm62_vm6 = vcmp.lt.s32.totalorder %v39_v16, %v59_v30  ;;  %v66_v31 = vsub.s32 %v59_v30, %v60_v28  ;;  %vm370_vm1 = vcmp.lt.s32.totalorder %v978_v10, %v871_v21 }
  0x1c   :  { %vm63_vm7 = vmand %vm61_vm5, %vm62_vm6 }
  0x1d   :  { %v591_v32 = vsel %vm63_vm7, 1.0, %v756_v7  ;;  %vm67_vm10 = vcmp.gt.s32.totalorder %v66_v31, 1  ;;  %vm334_vm7 = vcmp.lt.s32.totalorder %v978_v10, %v880_v24 }
  0x1e   :  { %708 = vmatpush3.bf16.msra.mxu0 %v707_v29  ;;  %v68_v39 = vsel %vm67_vm10, %v66_v31, 1 }
  0x1f   :  { %722 = vmatprep.subr.bf16.mxu0 %v721_v38  ;;  %v69_v40 = vcvt.s32.f32 %v68_v39 }
  0x21   :  { %653 = vmatmul.mubr.msk.f32.vlgmr.msra.gmra.mrb[0].mxu0 %vm70_vm8, %v591_v32  ;;  %737 = vrcp.f32 %v69_v40  ;;  %vm406_vm8 = vcmp.lt.s32.totalorder %v978_v10, %v856_v17 }
  0x22   :  { %685 = vmatprep.mubr.msk.f32.mxu0 %vm1109_vm9, %v803_v0  ;;  %724 = vmatpush3.bf16.msra.mxu0 %v721_v38  ;;  %v318_v0 = vadd.s32 24, %v825_v8 }
  0x23   :  { %726 = vmatprep.subr.bf16.mxu0 %v725_v53 }
  0x24   :  { %vm366_vm2 = vcmp.lt.s32.totalorder %v318_v0, %v871_v21 }
  0x26   :  { %728 = vmatpush3.bf16.msra.mxu0 %v725_v53 }
  0x29   :  { %686 = vmatmul.mubr.msk.f32.vlgmr.msra.gmra.mrb[2].mxu0 %vm1109_vm9, %v808_v1  ;;  %v325_v1 = vsub.s32 3, %v825_v8 }
  0x2a   :  { %688 = vmatprep.mubr.msk.f32.mxu0 %vm1109_vm9, %v813_v2  ;;  %v317_v2 = vadd.s32 16, %v825_v8 }
  0x2b   :  { %v738_v43 = vpop.eup %737 }
  0x2c   :  { %vm329_vm4 = vcmp.lt.s32.totalorder %v317_v2, %v880_v24  ;;  %vm365_vm5 = vcmp.lt.s32.totalorder %v317_v2, %v871_v21 }
  0x2d   :  { %689 = vmatmul.mubr.msk.f32.gmra.mrb[4].mxu0 %vm1109_vm9, %v821_v6  ;;  %v961_v6 = vadd.s32 40, %v825_v8 }
  0xf4   :  { %v140_v44 = vpop.f32.mrb[0].mxu0 }
  0xf5   :  { %v145_v46 = vmul.f32 %v738_v43, %v140_v44  ;;  %v654_v47 = vpop.f32.mrb[1].mxu0 }
  0xf7   :  { %664 = vmatmul.mubr.msk.f32.vlgmr.msra.gmra.mrb[0].mxu1 %vm1109_vm9, %v145_v46 }
  0xf8   :  { %717 = vmatpush3.bf16.msra.mxu1 %v716_v45  ;;  %674 = vmatprep.mubr.msk.f32.mxu1 %vm755_vm0, %v756_v7  ;;  %v968_v7 = vadd.s32 32, %v825_v8  ;;  %vm330_vm0 = vcmp.lt.s32.totalorder %v318_v0, %v880_v24 }
  0xf9   :  { %718 = vmatprep.subr.bf16.mxu1 %v754_v4  ;;  %v389_v4 = vsub.s32 1, %v825_v8 }
  0xfa   :  { %vm403_vm6 = vcmp.lt.s32.totalorder %v968_v7, %v856_v17 }
  0xfc   :  { %720 = vmatpush3.bf16.msra.mxu1 %v719_v50  ;;  %v687_v59 = vpop.f32.mrb[2].mxu0 }
  0xfd   :  { %729 = vmatprep.subr.bf16.mxu1 %v721_v38  ;;  %v529_v60 = vpop.f32.mrb[3].mxu0 }
 0x100   :  { %v690_v61 = vpop.f32.mrb[4].mxu0 }
 0x101   :  { %v539_v62 = vpop.f32.mrb[5].mxu0 }
 0x1ca   :  { %v227_v55 = vpop.f32.mrb[0].mxu1 }
 0x1cb   :  { %v228_v56 = vadd.f32 %v593_v54, %v227_v55  ;;  %v665_v57 = vpop.f32.mrb[1].mxu1 }
 0x1cd   :  { %v231_v58 = vmax.f32 %v228_v56, 0.0 }
 0x1cf   :  { %675 = vmatmul.mubr.msk.f32.vlgmr.msra.gmra.mrb[2].mxu1 %vm1109_vm9, %v231_v58 }
 0x1d0   :  { %731 = vmatpush3.bf16.msra.mxu1 %v721_v38  ;;  %691 = vmatprep.mubr.msk.f32.mxu1 %vm1109_vm9, %v844_v12  ;;  %v321_v12 = vadd.s32 48, %v825_v8 }
 0x1d1   :  { %730 = vmatprep.subr.bf16.mxu1 %v725_v53 }
 0x1d2   :  { %vm369_vm3 = vcmp.lt.s32.totalorder %v321_v12, %v871_v21  ;;  %vm405_vm10 = vcmp.lt.s32.totalorder %v321_v12, %v856_v17 }
 0x1d4   :  { %732 = vmatpush3.bf16.msra.mxu1 %v725_v53 }
 0x1d7   :  { %692 = vmatmul.mubr.msk.f32.vlgmr.msra.gmra.mrb[4].mxu1 %vm1109_vm9, %v849_v13 }
 0x1d8   :  { %694 = vmatprep.mubr.msk.f32.mxu1 %vm1109_vm9, %v863_v18 }
 0x1db   :  { %695 = vmatmul.mubr.msk.f32.gmra.mrb[6].mxu1 %vm1109_vm9, %v868_v19  ;;  %vm333_vm9 = vcmp.lt.s32.totalorder %v321_v12, %v880_v24 }
 0x2a2   :  { %v312_v11 = vpop.f32.mrb[2].mxu1 }
 0x2a3   :  { %v313_v13 = vadd.f32 %v595_v9, %v312_v11  ;;  %v676_v14 = vpop.f32.mrb[3].mxu1 }
 0x2a5   :  { %v326_v15 = vrot.slane %v313_v13, %v325_v1  ;;  %v354_v16 = vrot.slane %v313_v13, %v353_v3  ;;  %v390_v18 = vrot.slane %v313_v13, %v389_v4  ;;  %v426_v19 = vrot.slane %v313_v13, %v425_v5 }
 0x2a7   :  { %v356_v20 = vsel %vm328_vm11, %v354_v16, %v326_v15  ;;  %v355_v22 = vsel %vm327_vm13, %v354_v16, %v326_v15  ;;  %v358_v23 = vsel %vm330_vm0, %v354_v16, %v326_v15  ;;  %v357_v25 = vsel %vm329_vm4, %v354_v16, %v326_v15 }
 0x2a8   :  { %v392_v26 = vsel %vm364_vm12, %v390_v18, %v356_v20  ;;  %v391_v27 = vsel %vm363_vm15, %v390_v18, %v355_v22  ;;  %v394_v28 = vsel %vm366_vm2, %v390_v18, %v358_v23  ;;  %v393_v29 = vsel %vm365_vm5, %v390_v18, %v357_v25 }
 0x2a9   :  { %v428_v30 = vsel %vm400_vm14, %v426_v19, %v392_v26  ;;  %vm1110_vm11 = vcmp.lt.s32.totalorder %v825_v8, %v856_v17  ;;  %vm1111_vm13 = vcmp.lt.s32.totalorder %v318_v0, %v856_v17  ;;  %vm1112_vm12 = vcmp.lt.s32.totalorder %v317_v2, %v856_v17 }
 0x2aa   :  { %v427_v31 = vsel %vm1110_vm11, %v426_v19, %v391_v27  ;;  %v430_v32 = vsel %vm1111_vm13, %v426_v19, %v394_v28  ;;  %v429_v33 = vsel %vm1112_vm12, %v426_v19, %v393_v29  ;;  %v535_v34 = vadd.f32 %v687_v59, %v428_v30  ;;  %v693_v38 = vpop.f32.mrb[4].mxu1 }
 0x2ab   :  { %v530_v35 = vadd.f32 %v529_v60, %v427_v31  ;;  %v545_v36 = vadd.f32 %v690_v61, %v430_v32  ;;  %v540_v37 = vadd.f32 %v539_v62, %v429_v33  ;;  %vm1113_vm15 = vcmp.lt.s32.totalorder %v961_v6, %v880_v24  ;;  %v549_v40 = vpop.f32.mrb[5].mxu1 }
 0x2ac   :  { %v360_v39 = vsel %vm1113_vm15, %v354_v16, %v326_v15  ;;  %vm1114_vm14 = vcmp.lt.s32.totalorder %v968_v7, %v880_v24  ;;  %v362_v41 = vsel %vm334_vm7, %v354_v16, %v326_v15  ;;  %v361_v42 = vsel %vm333_vm9, %v354_v16, %v326_v15 }
 0x2ad   :  { %v359_v8 = vsel %vm1114_vm14, %v354_v16, %v326_v15  ;;  %v569_v43 = vmax.f32 %v535_v34, 0.0  ;;  %v568_v44 = vmax.f32 %v530_v35, 0.0  ;;  %v571_v45 = vmax.f32 %v545_v36, 0.0 }
 0x2ae   :  { %v570_v46 = vmax.f32 %v540_v37, 0.0  ;;  %vm1115_vm0 = vcmp.lt.s32.totalorder %v961_v6, %v871_v21  ;;  %vm1116_vm2 = vcmp.lt.s32.totalorder %v968_v7, %v871_v21  ;;  %v398_v49 = vsel %vm370_vm1, %v390_v18, %v362_v41  ;;  %v696_v52 = vpop.f32.mrb[6].mxu1 }
 0x2af   :  { %v396_v47 = vsel %vm1115_vm0, %v390_v18, %v360_v39  ;;  %v395_v48 = vsel %vm1116_vm2, %v390_v18, %v359_v8  ;;  %v397_v24 = vsel %vm369_vm3, %v390_v18, %v361_v42  ;;  %vm1117_vm9 = vcmask 261120   ;;  %v559_v57 = vpop.f32.mrb[7].mxu1 }
 0x2b0   :  { %577 = vst.msk [vmem:[%s1108_s7 + $0x8] sm:$0xff] %vm1117_vm9, %v569_v43  ;;  %vm1118_vm4 = vmmov %vm1117_vm9  ;;  %vm1121_vm1 = vcmp.lt.s32.totalorder %v961_v6, %v856_v17  ;;  %v431_v50 = vsel %vm403_vm6, %v426_v19, %v395_v48  ;;  %v434_v51 = vsel %vm406_vm8, %v426_v19, %v398_v49  ;;  %v433_v56 = vsel %vm405_vm10, %v426_v19, %v397_v24 }
 0x2b1   :  { %576 = vst.msk [vmem:[%s1108_s7] sm:$0xff] %vm1118_vm4, %v568_v44  ;;  %vm1119_vm5 = vmmov %vm1118_vm4  ;;  %v432_v21 = vsel %vm1121_vm1, %v426_v19, %v396_v47  ;;  %v550_v54 = vadd.f32 %v549_v40, %v431_v50  ;;  %v565_v55 = vadd.f32 %v696_v52, %v434_v51  ;;  %v560_v58 = vadd.f32 %v559_v57, %v433_v56 }
 0x2b2   :  { %579 = vst.msk [vmem:[%s1108_s7 + $0x18] sm:$0xff] %vm1119_vm5, %v571_v45  ;;  %vm1120_vm7 = vmmov %vm1118_vm4  ;;  %v555_v53 = vadd.f32 %v693_v38, %v432_v21 }
 0x2b3   :  { %578 = vst.msk [vmem:[%s1108_s7 + $0x10] sm:$0xff] %vm1120_vm7, %v570_v46  ;;  %v572_v60 = vmax.f32 %v550_v54, 0.0  ;;  %v575_v61 = vmax.f32 %v565_v55, 0.0  ;;  %v574_v62 = vmax.f32 %v560_v58, 0.0  ;;  %vm1122_vm3 = vmmov %vm1118_vm4 }
 0x2b4   :  { %v573_v59 = vmax.f32 %v555_v53, 0.0  ;;  %vm1123_vm6 = vmmov %vm1122_vm3 }
 0x2b5   :  { %580 = vst.msk [vmem:[%s1108_s7 + $0x20] sm:$0xff] %vm1123_vm6, %v572_v60  ;;  %vm1124_vm8 = vmmov %vm1122_vm3 }
 0x2b6   :  { %581 = vst.msk [vmem:[%s1108_s7 + $0x28] sm:$0xff] %vm1122_vm3, %v573_v59  ;;  %vm1125_vm10 = vmmov %vm1122_vm3 }
 0x2b7   :  { %583 = vst.msk [vmem:[%s1108_s7 + $0x38] sm:$0xff] %vm1124_vm8, %v575_v61 }
 0x2b8   :  { %582 = vst.msk [vmem:[%s1108_s7 + $0x30] sm:$0xff] %vm1125_vm10, %v574_v62 }

</bundles_post_ra>
